<compile_context>
chip_gen: v7x
topology: tpu7x:2x2x1
jax: 0.10.0
libtpu: 0.0.40
codegen_flags: <defaults>
</compile_context>

<pallas_src>
import functools

import jax
import jax.numpy as jnp
from jax.experimental import pallas as pl
from jax.experimental.pallas import tpu as pltpu


def _round_up(x, m):
    return ((x + m - 1) // m) * m


def mlp_kernel(n_hidden, approx_recip, x_ref, *refs):
    # refs = (w0, b0, wh_0, bh_0, ..., wh_{n-1}, bh_{n-1}, w_out, b_out, o_ref)
    o_ref = refs[-1]
    p = refs[:-1]

    h = x_ref[...]  # (TB, in_dim), f32

    # input layer + softsign (reciprocal -> EUP slot, frees VALU)
    w, b = p[0], p[1]
    h = jnp.dot(h.astype(w.dtype), w[...],
                preferred_element_type=jnp.float32) + b[...]
    h = h * pl.reciprocal(1.0 + jnp.abs(h), approx=approx_recip)

    # hidden layers + relu
    for i in range(n_hidden):
        w = p[2 + 2 * i]
        b = p[3 + 2 * i]
        h = jnp.dot(h.astype(w.dtype), w[...],
                    preferred_element_type=jnp.float32) + b[...]
        h = jnp.maximum(h, 0.0)

    # output layer (no activation); lane-dense (padded) store
    w, b = p[-2], p[-1]
    out = jnp.dot(h.astype(w.dtype), w[...],
                  preferred_element_type=jnp.float32) + b[...]
    o_ref[...] = out.astype(o_ref.dtype)


def nn_classifier_forward(x, params, *, block_batch=256,
                          matmul_dtype=jnp.bfloat16, approx_softsign=True):
    """params: list of (W, b) with W already transposed to (in, out), b (out,)."""
    n_hidden = len(params) - 2
    batch, in_dim = x.shape
    out_dim = params[-1][0].shape[1]

    # ---- batch tiling: TB multiple of 8 sublanes, pad batch to a multiple --
    tb = min(block_batch, _round_up(batch, 8))
    padded_batch = _round_up(batch, tb)
    if padded_batch != batch:
        x = jnp.pad(x, ((0, padded_batch - batch), (0, 0)))

    # ---- lane-dense output: pad out_dim up to a multiple of 128 lanes ------
    out_pad = _round_up(out_dim, 128)

    flat_inputs = [x]
    in_specs = [pl.BlockSpec((tb, in_dim), lambda i: (i, 0))]
    for li, (w, b) in enumerate(params):
        if li == len(params) - 1 and out_pad != out_dim:
            w = jnp.pad(w, ((0, 0), (0, out_pad - out_dim)))
            b = jnp.pad(b, ((0, out_pad - out_dim),))
        w = w.astype(matmul_dtype)              # bf16 feed to the MXU
        b2 = b.reshape(1, -1).astype(jnp.float32)  # bias add stays f32
        flat_inputs += [w, b2]
        in_specs += [
            pl.BlockSpec(w.shape, lambda i: (0, 0)),   # VMEM-resident weights
            pl.BlockSpec(b2.shape, lambda i: (0, 0)),
        ]

    out_shape = jax.ShapeDtypeStruct((padded_batch, out_pad), jnp.float32)
    out_spec = pl.BlockSpec((tb, out_pad), lambda i: (i, 0))

    kernel = functools.partial(mlp_kernel, n_hidden, approx_softsign)

    out = pl.pallas_call(
        kernel,
        out_shape=out_shape,
        grid=(padded_batch // tb,),
        in_specs=in_specs,
        out_specs=out_spec,
        compiler_params=pltpu.CompilerParams(
            dimension_semantics=("parallel",),   # megacore shard on v7x
        ),
    )(*flat_inputs)

    return out[:batch, :out_dim]


def init_params(list_layer, key):
    """Deterministic PyTorch-style init: U(-1/sqrt(fan_in), 1/sqrt(fan_in)).

    list_layer entries are (in_features, out_features) like nn.Linear(*entry).
    Returns weights transposed to (in, out) for the kernel layout.
    """
    params = []
    for (fan_in, fan_out) in list_layer:
        key, kw, kb = jax.random.split(key, 3)
        bound = 1.0 / jnp.sqrt(jnp.float32(fan_in))
        w = jax.random.uniform(kw, (fan_in, fan_out), jnp.float32, -bound, bound)
        b = jax.random.uniform(kb, (fan_out,), jnp.float32, -bound, bound)
        params.append((w, b))
    return params


def reference_forward(x, params):
    """Pure-JAX f32 reference matching the PyTorch forward."""
    w, b = params[0]
    h = x @ w + b
    h = h / (1.0 + jnp.abs(h))
    for (w, b) in params[1:-1]:
        h = jnp.maximum(h @ w + b, 0.0)
    w, b = params[-1]
    return h @ w + b


if __name__ == "__main__":
    # NNClassifier([(32, 64), (64, 64), (64, 16)]):
    #   func_in: Linear(32 -> 64), one hidden layer Linear(64 -> 64),
    #   func_out: Linear(64 -> 16)
    list_layer = [(32, 64), (64, 64), (64, 16)]
    out_dim = list_layer[-1][1]

    key = jax.random.PRNGKey(0)
    key, kx, kx2 = jax.random.split(key, 3)
    params = init_params(list_layer, key)

    # --- small batch: exact f32 path vs reference ---------------------------
    batch = 8
    x = jax.random.normal(kx, (batch, list_layer[0][0]), jnp.float32)
    ref = reference_forward(x, params)

    out_f32 = nn_classifier_forward(
        x, params, matmul_dtype=jnp.float32, approx_softsign=False)
    out_f32 = jax.block_until_ready(out_f32)
    assert out_f32.shape == (batch, out_dim)
    assert jnp.allclose(out_f32, ref, atol=1e-5, rtol=1e-5)

    # --- same batch: perf path (bf16 MXU inputs, f32 accumulate, EUP recip) -
    out_bf16 = nn_classifier_forward(x, params)
    out_bf16 = jax.block_until_ready(out_bf16)
    assert out_bf16.shape == (batch, out_dim)
    assert jnp.allclose(out_bf16, ref, atol=3e-2, rtol=3e-2)

    # --- ragged batch exercising the batch grid + padding (grid=(2,)) -------
    batch2 = 300
    x2 = jax.random.normal(kx2, (batch2, list_layer[0][0]), jnp.float32)
    ref2 = reference_forward(x2, params)
    out2 = nn_classifier_forward(x2, params, block_batch=256)
    out2 = jax.block_until_ready(out2)
    assert out2.shape == (batch2, out_dim)
    assert jnp.allclose(out2, ref2, atol=3e-2, rtol=3e-2)

    print("KERNEL_OK")
</pallas_src>

<mosaic_0001>
module attributes {stable_mosaic.version = 11 : i64} {
  func.func @mlp_kernel(%arg0: i32, %arg1: memref<8x32xf32, #tpu.memory_space<vmem>>, %arg2: memref<32x64xf32, #tpu.memory_space<vmem>>, %arg3: memref<1x64xf32, #tpu.memory_space<vmem>>, %arg4: memref<64x64xf32, #tpu.memory_space<vmem>>, %arg5: memref<1x64xf32, #tpu.memory_space<vmem>>, %arg6: memref<64x128xf32, #tpu.memory_space<vmem>>, %arg7: memref<1x128xf32, #tpu.memory_space<vmem>>, %arg8: memref<8x128xf32, #tpu.memory_space<vmem>>) attributes {dimension_semantics = [#tpu.dimension_semantics<parallel>], iteration_bounds = array<i64: 1>, scalar_prefetch = 0 : i64, scratch_operands = 0 : i64, tpu.core_type = #tpu.core_type<tc>, window_params = [{transform_indices = @transform_0, window_bounds = array<i64: 8, 32>}, {pipeline_mode = #tpu.pipeline_mode<synchronous>, transform_indices = @transform_1, window_bounds = array<i64: 32, 64>}, {pipeline_mode = #tpu.pipeline_mode<synchronous>, transform_indices = @transform_2, window_bounds = array<i64: 1, 64>}, {pipeline_mode = #tpu.pipeline_mode<synchronous>, transform_indices = @transform_3, window_bounds = array<i64: 64, 64>}, {pipeline_mode = #tpu.pipeline_mode<synchronous>, transform_indices = @transform_4, window_bounds = array<i64: 1, 64>}, {pipeline_mode = #tpu.pipeline_mode<synchronous>, transform_indices = @transform_5, window_bounds = array<i64: 64, 128>}, {pipeline_mode = #tpu.pipeline_mode<synchronous>, transform_indices = @transform_6, window_bounds = array<i64: 1, 128>}, {transform_indices = @transform_7, window_bounds = array<i64: 8, 128>}]} {
    %c0 = arith.constant 0 : index
    %c0_0 = arith.constant 0 : index
    %0 = vector.load %arg1[%c0, %c0_0] : memref<8x32xf32, #tpu.memory_space<vmem>>, vector<8x32xf32>
    %c0_1 = arith.constant 0 : index
    %c0_2 = arith.constant 0 : index
    %1 = vector.load %arg2[%c0_1, %c0_2] : memref<32x64xf32, #tpu.memory_space<vmem>>, vector<32x64xf32>
    %cst = arith.constant dense<0.000000e+00> : vector<8x64xf32>
    %2 = tpu.matmul %0, %1, %cst {dimension_numbers = #tpu.dot_dimension_numbers<[1], [0], [0], [1], [0, 0, 1, 1], [], []>} : vector<8x32xf32>, vector<32x64xf32>, vector<8x64xf32> -> vector<8x64xf32>
    %c0_3 = arith.constant 0 : index
    %c0_4 = arith.constant 0 : index
    %3 = vector.load %arg3[%c0_3, %c0_4] : memref<1x64xf32, #tpu.memory_space<vmem>>, vector<1x64xf32>
    %4 = vector.broadcast %3 : vector<1x64xf32> to vector<8x64xf32>
    %5 = arith.addf %2, %4 : vector<8x64xf32>
    %6 = math.absf %5 : vector<8x64xf32>
    %cst_5 = arith.constant 1.000000e+00 : f32
    %7 = vector.broadcast %cst_5 : f32 to vector<8x64xf32>
    %8 = arith.addf %7, %6 : vector<8x64xf32>
    %9 = tpu.reciprocal %8 : vector<8x64xf32> -> vector<8x64xf32>
    %10 = arith.mulf %5, %9 : vector<8x64xf32>
    %c0_6 = arith.constant 0 : index
    %c0_7 = arith.constant 0 : index
    %11 = vector.load %arg4[%c0_6, %c0_7] : memref<64x64xf32, #tpu.memory_space<vmem>>, vector<64x64xf32>
    %cst_8 = arith.constant dense<0.000000e+00> : vector<8x64xf32>
    %12 = tpu.matmul %10, %11, %cst_8 {dimension_numbers = #tpu.dot_dimension_numbers<[1], [0], [0], [1], [0, 0, 1, 1], [], []>} : vector<8x64xf32>, vector<64x64xf32>, vector<8x64xf32> -> vector<8x64xf32>
    %c0_9 = arith.constant 0 : index
    %c0_10 = arith.constant 0 : index
    %13 = vector.load %arg5[%c0_9, %c0_10] : memref<1x64xf32, #tpu.memory_space<vmem>>, vector<1x64xf32>
    %14 = vector.broadcast %13 : vector<1x64xf32> to vector<8x64xf32>
    %15 = arith.addf %12, %14 : vector<8x64xf32>
    %cst_11 = arith.constant 0.000000e+00 : f32
    %16 = vector.broadcast %cst_11 : f32 to vector<8x64xf32>
    %17 = arith.maximumf %15, %16 : vector<8x64xf32>
    %c0_12 = arith.constant 0 : index
    %c0_13 = arith.constant 0 : index
    %18 = vector.load %arg6[%c0_12, %c0_13] : memref<64x128xf32, #tpu.memory_space<vmem>>, vector<64x128xf32>
    %cst_14 = arith.constant dense<0.000000e+00> : vector<8x128xf32>
    %19 = tpu.matmul %17, %18, %cst_14 {dimension_numbers = #tpu.dot_dimension_numbers<[1], [0], [0], [1], [0, 0, 1, 1], [], []>} : vector<8x64xf32>, vector<64x128xf32>, vector<8x128xf32> -> vector<8x128xf32>
    %c0_15 = arith.constant 0 : index
    %c0_16 = arith.constant 0 : index
    %20 = vector.load %arg7[%c0_15, %c0_16] : memref<1x128xf32, #tpu.memory_space<vmem>>, vector<1x128xf32>
    %21 = vector.broadcast %20 : vector<1x128xf32> to vector<8x128xf32>
    %22 = arith.addf %19, %21 : vector<8x128xf32>
    %c0_17 = arith.constant 0 : index
    %c0_18 = arith.constant 0 : index
    %23 = vector.load %arg8[%c0_17, %c0_18] : memref<8x128xf32, #tpu.memory_space<vmem>>, vector<8x128xf32>
    tpu.vector_store %arg8[%c0_17, %c0_18], %22 {strides = array<i32>} : memref<8x128xf32, #tpu.memory_space<vmem>>, vector<8x128xf32>,
    return
  }
  func.func @transform_0(%arg0: i32) -> (i32, i32) {
    %c0_i32 = arith.constant 0 : i32
    %c0_i32_0 = arith.constant 0 : i32
    return %arg0, %c0_i32 : i32, i32
  }
  func.func @transform_1(%arg0: i32) -> (i32, i32) {
    %c0_i32 = arith.constant 0 : i32
    %c0_i32_0 = arith.constant 0 : i32
    %c0_i32_1 = arith.constant 0 : i32
    return %c0_i32, %c0_i32_0 : i32, i32
  }
  func.func @transform_2(%arg0: i32) -> (i32, i32) {
    %c0_i32 = arith.constant 0 : i32
    %c0_i32_0 = arith.constant 0 : i32
    %c0_i32_1 = arith.constant 0 : i32
    return %c0_i32, %c0_i32_0 : i32, i32
  }
  func.func @transform_3(%arg0: i32) -> (i32, i32) {
    %c0_i32 = arith.constant 0 : i32
    %c0_i32_0 = arith.constant 0 : i32
    %c0_i32_1 = arith.constant 0 : i32
    return %c0_i32, %c0_i32_0 : i32, i32
  }
  func.func @transform_4(%arg0: i32) -> (i32, i32) {
    %c0_i32 = arith.constant 0 : i32
    %c0_i32_0 = arith.constant 0 : i32
    %c0_i32_1 = arith.constant 0 : i32
    return %c0_i32, %c0_i32_0 : i32, i32
  }
  func.func @transform_5(%arg0: i32) -> (i32, i32) {
    %c0_i32 = arith.constant 0 : i32
    %c0_i32_0 = arith.constant 0 : i32
    %c0_i32_1 = arith.constant 0 : i32
    return %c0_i32, %c0_i32_0 : i32, i32
  }
  func.func @transform_6(%arg0: i32) -> (i32, i32) {
    %c0_i32 = arith.constant 0 : i32
    %c0_i32_0 = arith.constant 0 : i32
    %c0_i32_1 = arith.constant 0 : i32
    return %c0_i32, %c0_i32_0 : i32, i32
  }
  func.func @transform_7(%arg0: i32) -> (i32, i32) {
    %c0_i32 = arith.constant 0 : i32
    %c0_i32_0 = arith.constant 0 : i32
    return %arg0, %c0_i32 : i32, i32
  }
}

</mosaic_0001>

<bundles_post_ra>
// kernel: tpu_custom_call.1
= control target key start
LH: loop header
LB: loop body
LE: loop exit
PB: predicated region body
PF: predicated region fallthrough
CT: control target
= control target key end

     0   :  { %12 = vsyncpa [#allocation3], 0  ;;  %s735_s0 = inlined_call_operand.hbm [shape: f32[8,32], index: 0, kind: input, shape index: {}]   ;;  %s736_s1 = inlined_call_operand.hbm [shape: f32[32,64], index: 1, kind: input, shape index: {}]   ;;  %s737_s2 = inlined_call_operand.vmem [shape: f32[1,64], index: 2, kind: input, shape index: {}]   ;;  %s738_s3 = inlined_call_operand.hbm [shape: f32[64,64], index: 3, kind: input, shape index: {}]   ;;  %s739_s4 = inlined_call_operand.vmem [shape: f32[1,64], index: 4, kind: input, shape index: {}]   ;;  %s740_s5 = inlined_call_operand.hbm [shape: f32[64,128], index: 5, kind: input, shape index: {}]   ;;  %s741_s6 = inlined_call_operand.vmem [shape: f32[1,128], index: 6, kind: input, shape index: {}]   ;;  %s742_s7 = inlined_call_operand.hbm [shape: f32[8,128], index: 7, kind: output, shape index: {}]  }
   0x1   :  { %13 = vsyncpa [#allocation6], 0 }
   0x2   :  { %14 = vsyncpa [#allocation9], 0 }
   0x3   :  { %15 = vsyncpa [#allocation4], 0  ;;  %s604_s24 = smov [#allocation5]   ;;  %s486_s28 = scalar_lea.hbm %s736_s1, 512 }
   0x4   :  { %s31_s25 = sshll.u32 %s604_s24, 4  ;;  %p487_p0 = scmp.ne.s32.totalorder %s736_s1, %s486_s28  ;;  %s32_s25 = int_to_ptr.vmem [resolvable:$true] %s31_s25 }
   0x5   :  { %p490_p1 = scmp.lt.u32.totalorder %s486_s28, %s736_s1 }
   0x7   :  { %p492_p2 = pnand %p490_p1, %p487_p0 }
   0x9   :  { %495 = shalt.err (!%p492_p2)
}
   0xa   :  { %s496_s10 = scalar_lea.vmem %s32_s25, 512  ;;  %p501_p4 = scmp.lt.s32.totalorder %s32_s25, %s32_s25 }
   0xb   :  { %p497_p3 = scmp.ne.s32.totalorder %s32_s25, %s496_s10  ;;  %p502_p5 = scmp.lt.s32.totalorder %s496_s10, %s496_s10 }
   0xd   :  { %p503_p6 = por %p502_p5, %p501_p4 }
   0xf   :  { %p504_p7 = pnand %p503_p6, %p497_p3 }
  0x11   :  { %507 = shalt.err (!%p504_p7)
}
  0x12   :  { %s605_s11 = smov 128   ;;  %s606_s12 = smov 8  }
  0x13   :  { %37 = dma.hbm_to_vmem [thread:$0]  %s736_s1, 512, %s32_s25, [#allocation6], %s605_s11, %s605_s11, %s606_s12  }
  0x14   :  { %s607_s15 = smov [#allocation2]   ;;  %s608_s17 = smov [#allocation7]  }
  0x15   :  { %s22_s16 = sshll.u32 %s607_s15, 4  ;;  %s45_s18 = sshll.u32 %s608_s17, 4  ;;  %s23_s16 = int_to_ptr.vmem [resolvable:$true] %s22_s16  ;;  %s46_s18 = int_to_ptr.vmem [resolvable:$true] %s45_s18 }
  0x16   :  { %s508_s21 = scalar_lea.hbm %s735_s0, 128 }
  0x17   :  { %p509_p8 = scmp.ne.s32.totalorder %s735_s0, %s508_s21  ;;  %p512_p9 = scmp.lt.u32.totalorder %s508_s21, %s735_s0 }
  0x19   :  { %p514_p10 = pnand %p512_p9, %p509_p8 }
  0x1b   :  { %517 = shalt.err (!%p514_p10)
}
  0x1c   :  { %s518_s1 = scalar_lea.vmem %s23_s16, 128  ;;  %p523_p12 = scmp.lt.s32.totalorder %s23_s16, %s23_s16 }
  0x1d   :  { %p519_p11 = scmp.ne.s32.totalorder %s23_s16, %s518_s1  ;;  %p524_p13 = scmp.lt.s32.totalorder %s518_s1, %s518_s1 }
  0x1f   :  { %p525_p0 = por %p524_p13, %p523_p12 }
  0x21   :  { %p526_p1 = pnand %p525_p0, %p519_p11 }
  0x23   :  { %529 = shalt.err (!%p526_p1)
}
  0x24   :  { %25 = dma.hbm_to_vmem [thread:$0]  %s735_s0, 128, %s23_s16, [#allocation3]  }
  0x25   :  { %s530_s30 = scalar_lea.hbm %s738_s3, 1024 }
  0x26   :  { %p531_p2 = scmp.ne.s32.totalorder %s738_s3, %s530_s30  ;;  %p534_p3 = scmp.lt.u32.totalorder %s530_s30, %s738_s3 }
  0x28   :  { %p536_p4 = pnand %p534_p3, %p531_p2 }
  0x2a   :  { %539 = shalt.err (!%p536_p4)
}
  0x2b   :  { %s540_s14 = scalar_lea.vmem %s46_s18, 1024  ;;  %p545_p6 = scmp.lt.s32.totalorder %s46_s18, %s46_s18 }
  0x2c   :  { %p541_p5 = scmp.ne.s32.totalorder %s46_s18, %s540_s14  ;;  %p546_p7 = scmp.lt.s32.totalorder %s540_s14, %s540_s14 }
  0x2e   :  { %p547_p8 = por %p546_p7, %p545_p6 }
  0x30   :  { %p548_p9 = pnand %p547_p8, %p541_p5 }
  0x32   :  { %551 = shalt.err (!%p548_p9)
}
  0x33   :  { %51 = dma.hbm_to_vmem [thread:$0]  %s738_s3, 1024, %s46_s18, [#allocation6], %s605_s11, %s605_s11, %s606_s12  }
  0x34   :  { %s609_s16 = smov [#allocation8]   ;;  %s552_s21 = scalar_lea.hbm %s740_s5, 1024 }
  0x35   :  { %s59_s17 = sshll.u32 %s609_s16, 4  ;;  %p553_p10 = scmp.ne.s32.totalorder %s740_s5, %s552_s21  ;;  %s60_s17 = int_to_ptr.vmem [resolvable:$true] %s59_s17 }
  0x36   :  { %p556_p11 = scmp.lt.u32.totalorder %s552_s21, %s740_s5 }
  0x38   :  { %p558_p12 = pnand %p556_p11, %p553_p10 }
  0x3a   :  { %561 = shalt.err (!%p558_p12)
}
  0x3b   :  { %s562_s1 = scalar_lea.vmem %s60_s17, 1024  ;;  %p567_p0 = scmp.lt.s32.totalorder %s60_s17, %s60_s17 }
  0x3c   :  { %p563_p13 = scmp.ne.s32.totalorder %s60_s17, %s562_s1  ;;  %p568_p1 = scmp.lt.s32.totalorder %s562_s1, %s562_s1 }
  0x3e   :  { %p569_p2 = por %p568_p1, %p567_p0 }
  0x40   :  { %p570_p3 = pnand %p569_p2, %p563_p13 }
  0x42   :  { %573 = shalt.err (!%p570_p3)
}
  0x43   :  { %65 = dma.hbm_to_vmem [thread:$0]  %s740_s5, 1024, %s60_s17, [#allocation9], %s605_s11, %s605_s11, %s606_s12  }
  0x44   :  { %596 = dma.done.wait [#allocation3], 128  }
  0x45   :  { %597 = vsyncadd [#allocation3], 4294967168 }
  0x46   :  { %598 = dma.done.wait [#allocation6], 1536  }
  0x47   :  { %599 = vsyncadd [#allocation6], 4294965760 }
  0x48   :  { %600 = dma.done.wait [#allocation9], 1024  }
  0x49   :  { %601 = vsyncadd [#allocation9], 4294966272  ;;  %v610_v0 = vmov 0.0|0.0   ;;  %vm611_vm0 = vmmov 0   ;;  %v612_v1 = vmov 0.0   ;;  %v81_v2 = vld [vmem:[#allocation5] sm:$0xff] }
  0x4a   :  { %444 = vmatprep.subr.bf16.mxu0 %v610_v0  ;;  %403 = vmatprep.mubr.msk.f32.mxu0 %vm611_vm0, %v612_v1  ;;  %v82_v3 = vld [vmem:[#allocation5 + $0x8] sm:$0xff]  ;;  %v83_v4 = vld [vmem:[#allocation5 + $0x10] sm:$0xff]  ;;  %v84_v6 = vld [vmem:[#allocation5 + $0x18] sm:$0xff]  ;;  %vm92_vm1 = vcmask 261120   ;;  %vm185_vm2 = vcmask 523264   ;;  %s613_s28 = smov [#allocation10]  }
  0x4b   :  { %450 = vmatprep.subr.bf16.mxu1 %v610_v0  ;;  %422 = vmatprep.mubr.msk.f32.mxu1 %vm611_vm0, %v612_v1  ;;  %v445_v5 = vpack.c.bf16 %v82_v3, %v81_v2  ;;  %v448_v7 = vpack.c.bf16 %v84_v6, %v83_v4  ;;  %v80_v8 = vld [vmem:[#allocation2] sm:$0xff]  ;;  %v170_v9 = vld [vmem:[#allocation7] sm:$0xff]  ;;  %v171_v10 = vld [vmem:[#allocation7 + $0x8] sm:$0xff]  ;;  %s355_s29 = sshll.u32 %s613_s28, 4  ;;  %s356_s29 = int_to_ptr.vmem [resolvable:$true] %s355_s29 }
  0x4c   :  { %v451_v11 = vpack.c.bf16 %v171_v10, %v170_v9  ;;  %v172_v12 = vld [vmem:[#allocation7 + $0x10] sm:$0xff]  ;;  %v173_v13 = vld [vmem:[#allocation7 + $0x18] sm:$0xff]  ;;  %v174_v15 = vld [vmem:[#allocation7 + $0x20] sm:$0xff]  ;;  %s574_s30 = scalar_lea.vmem %s356_s29, 128  ;;  %p579_p5 = scmp.lt.s32.totalorder %s356_s29, %s356_s29 }
  0x4d   :  { %446 = vmatpush3.bf16.msra.mxu0 %v445_v5  ;;  %v454_v14 = vpack.c.bf16 %v173_v13, %v172_v12  ;;  %v175_v16 = vld [vmem:[#allocation7 + $0x28] sm:$0xff]  ;;  %v176_v18 = vld [vmem:[#allocation7 + $0x30] sm:$0xff]  ;;  %v177_v19 = vld [vmem:[#allocation7 + $0x38] sm:$0xff]  ;;  %p575_p4 = scmp.ne.s32.totalorder %s356_s29, %s574_s30  ;;  %p580_p6 = scmp.lt.s32.totalorder %s574_s30, %s574_s30 }
  0x4e   :  { %447 = vmatprep.subr.bf16.mxu0 %v610_v0  ;;  %452 = vmatpush3.bf16.msra.mxu1 %v451_v11  ;;  %v457_v17 = vpack.c.bf16 %v175_v16, %v174_v15  ;;  %v460_v20 = vpack.c.bf16 %v177_v19, %v176_v18  ;;  %v260_v21 = vld [vmem:[#allocation8] sm:$0xff]  ;;  %v261_v22 = vld [vmem:[#allocation8 + $0x8] sm:$0xff]  ;;  %v262_v23 = vld [vmem:[#allocation8 + $0x10] sm:$0xff] }
  0x4f   :  { %453 = vmatprep.subr.bf16.mxu1 %v610_v0  ;;  %v463_v24 = vpack.c.bf16 %v261_v22, %v260_v21  ;;  %v263_v25 = vld [vmem:[#allocation8 + $0x18] sm:$0xff]  ;;  %v264_v27 = vld [vmem:[#allocation8 + $0x20] sm:$0xff]  ;;  %v265_v28 = vld [vmem:[#allocation8 + $0x28] sm:$0xff]  ;;  %p581_p7 = por %p580_p6, %p579_p5 }
  0x50   :  { %v466_v26 = vpack.c.bf16 %v263_v25, %v262_v23  ;;  %v469_v29 = vpack.c.bf16 %v265_v28, %v264_v27  ;;  %v366_v30 = vld [vmem:[%s737_s2] ss:$0 sm:$0xff]  ;;  %v266_v38 = vld [vmem:[#allocation8 + $0x30] sm:$0xff] }
  0x51   :  { %449 = vmatpush3.bf16.msra.mxu0 %v448_v7  ;;  %v267_v39 = vld [vmem:[#allocation8 + $0x38] sm:$0xff]  ;;  %p582_p8 = pnand %p581_p7, %p575_p4 }
  0x52   :  { %462 = vmatprep.subr.bf16.mxu0 %v610_v0  ;;  %455 = vmatpush3.bf16.msra.mxu1 %v454_v14  ;;  %v472_v40 = vpack.c.bf16 %v267_v39, %v266_v38  ;;  %v368_v41 = vld [vmem:[%s739_s4] ss:$0 sm:$0xff] }
  0x53   :  { %456 = vmatprep.subr.bf16.mxu1 %v610_v0  ;;  %v370_v46 = vld [vmem:[%s741_s6] ss:$0 sm:$0xff] }
  0x54   :  { %404 = vmatmul.mubr.msk.f32.vlgmr.msra.gmra.mrb[0].mxu0 %vm92_vm1, %v80_v8 }
  0x55   :  { %441 = vmatprep.mubr.msk.f32.mxu0 %vm611_vm0, %v612_v1  ;;  %464 = vmatpush3.bf16.msra.mxu0 %v463_v24 }
  0x56   :  { %458 = vmatpush3.bf16.msra.mxu1 %v457_v17  ;;  %465 = vmatprep.subr.bf16.mxu0 %v610_v0 }
  0x57   :  { %459 = vmatprep.subr.bf16.mxu1 %v610_v0 }
  0x59   :  { %467 = vmatpush3.bf16.msra.mxu0 %v466_v26 }
  0x5a   :  { %461 = vmatpush3.bf16.msra.mxu1 %v460_v20  ;;  %468 = vmatprep.subr.bf16.mxu0 %v610_v0 }
  0x5d   :  { %470 = vmatpush3.bf16.msra.mxu0 %v469_v29 }
  0x5e   :  { %471 = vmatprep.subr.bf16.mxu0 %v610_v0 }
  0x61   :  { %473 = vmatpush3.bf16.msra.mxu0 %v472_v40 }
 0x127   :  { %v162_v31 = vpop.f32.mrb[0].mxu0 }
 0x128   :  { %v163_v32 = vadd.f32 %v366_v30, %v162_v31  ;;  %v405_v33 = vpop.f32.mrb[1].mxu0 }
 0x12a   :  { %v166_v34 = vand.u32 2147483647, %v163_v32 }
 0x12c   :  { %v167_v35 = vadd.f32 1.0, %v166_v34 }
 0x12e   :  { %484 = vrcp.f32 %v167_v35 }
 0x138   :  { %v485_v36 = vpop.eup %484 }
 0x139   :  { %v169_v37 = vmul.f32 %v485_v36, %v163_v32 }
 0x13b   :  { %423 = vmatmul.mubr.msk.f32.vlgmr.msra.gmra.mrb[0].mxu1 %vm185_vm2, %v169_v37 }
 0x20e   :  { %v255_v42 = vpop.f32.mrb[0].mxu1 }
 0x20f   :  { %v256_v43 = vadd.f32 %v368_v41, %v255_v42  ;;  %v424_v44 = vpop.f32.mrb[1].mxu1 }
 0x211   :  { %v259_v45 = vmax.f32 %v256_v43, 0.0 }
 0x213   :  { %442 = vmatmul.mubr.msk.f32.vlgmr.msra.gmra.mrb[2].mxu0 %vm185_vm2, %v259_v45 }
 0x2e6   :  { %v344_v47 = vpop.f32.mrb[2].mxu0 }
 0x2e7   :  { %v345_v48 = vadd.f32 %v370_v46, %v344_v47  ;;  %v443_v49 = vpop.f32.mrb[3].mxu0 }
 0x2e9   :  { %348 = vst [vmem:[#allocation10] sm:$0xff] %v345_v48 }
 0x2ea   :  { %585 = shalt.err (!%p582_p8)
}
 0x2eb   :  { %s586_s9 = scalar_lea.hbm %s742_s7, 128 }
 0x2ec   :  { %p587_p9 = scmp.ne.s32.totalorder %s742_s7, %s586_s9  ;;  %p590_p10 = scmp.lt.u32.totalorder %s586_s9, %s742_s7 }
 0x2ee   :  { %p592_p11 = pnand %p590_p10, %p587_p9 }
 0x2f0   :  { %595 = shalt.err (!%p592_p11)
}
 0x2f1   :  { %358 = dma.vmem_to_hbm [thread:$0]  %s356_s29, 128, %s742_s7, [#allocation4]  }
 0x2f2   :  { %602 = dma.done.wait [#allocation4], 128  }
 0x2f3   :  { %603 = vsyncadd [#allocation4], 4294967168 }
 0x2f4   :  { %362 = vsyncpa [#allocation3], 1 }
 0x2f5   :  { %363 = vsyncpa [#allocation6], 1 }
 0x2f6   :  { %364 = vsyncpa [#allocation9], 1 }
 0x2f7   :  { %365 = vsyncpa [#allocation4], 1 }

</bundles_post_ra>
